<compile_context>
chip_gen: v6e
topology: v6e:2x2x1
jax: 0.10.0
libtpu: 0.0.40
codegen_flags: <defaults>
</compile_context>

<pallas_src>
import functools

import jax
import jax.numpy as jnp
import numpy as np
from jax.experimental import pallas as pl
from jax.experimental.pallas import tpu as pltpu


def _round_up(x, m):
    return (x + m - 1) // m * m


# ----------------------------------------------------------------------------
# TODO(synk): add_dense_feature is external to model.py; we synthesize it as
# appending `num_features` copies of the normalized item id as dense features.
def add_dense_feature(ids, embedded, num_features, n_items):
    dense = (ids.astype(jnp.float32) / float(n_items))[..., None]
    dense = jnp.broadcast_to(dense, ids.shape + (num_features,))
    return jnp.concatenate([embedded, dense], axis=-1)


# ----------------------------------------------------------------------------
# Kernel 1: full single-layer GRU recurrence in ONE pallas_call (in-kernel time loop).
#   gi_ref  : (T, BP, 3*HP) precomputed input-side gates (+ folded biases), layout [r|z|n]
#   mask_ref: (T, BP, 1)    1.0 while t < length
#   wh3_ref : (HP, 3*HP)    fused hidden-side gate weights (transposed, padded)
#   bh3_ref : (1, 3*HP)     hidden-side bias (only the n-gate slot is non-zero)
def _gru_kernel(gi_ref, mask_ref, wh3_ref, bh3_ref, out_ref, hT_ref, h_scratch):
    T = gi_ref.shape[0]
    HP = h_scratch.shape[1]

    h_scratch[...] = jnp.zeros_like(h_scratch)          # hidden=None -> zeros

    @pl.loop(0, T)
    def _(t):
        h = h_scratch[...]                               # (BP, HP)
        gi = gi_ref[t]                                   # (BP, 3HP)
        m = mask_ref[t]                                  # (BP, 1)
        gh = jnp.dot(h, wh3_ref[...],
                     preferred_element_type=jnp.float32) + bh3_ref[...]
        r = jax.nn.sigmoid(gi[:, 0:HP] + gh[:, 0:HP])
        z = jax.nn.sigmoid(gi[:, HP:2 * HP] + gh[:, HP:2 * HP])
        n = jnp.tanh(gi[:, 2 * HP:3 * HP] + r * gh[:, 2 * HP:3 * HP])
        h_new = (1.0 - z) * n + z * h
        out_ref[t] = m * h_new                           # zero past length (pad_packed)
        h_scratch[...] = m * h_new + (1.0 - m) * h       # freeze past length (pack_padded)

    hT_ref[...] = h_scratch[...]                         # written once == hidden[-1]


def gru_forward(gi, len_mask, wh3, bh3):
    T, BP, three_hp = gi.shape
    HP = three_hp // 3
    return pl.pallas_call(
        _gru_kernel,
        out_shape=(jax.ShapeDtypeStruct((T, BP, HP), jnp.float32),
                   jax.ShapeDtypeStruct((BP, HP), jnp.float32)),
        scratch_shapes=[pltpu.VMEM((BP, HP), jnp.float32)],
        compiler_params=pltpu.CompilerParams(vmem_limit_bytes=32 * 1024 * 1024),
    )(gi, len_mask, wh3, bh3)


# ----------------------------------------------------------------------------
# Kernel 2: attention (a_1 / a_2 / v_t), local context, and the b-projection fold:
#   cw = [c_local, c_global] @ b_w  ->  (BP, DP) per-batch query over item-feature space.
def _attn_context_kernel(outs_ref, ht_ref, mask_ref, a1t_ref, a2t_ref, vt_ref,
                         bw_ref, cw_ref):
    T, BP, HP = outs_ref.shape
    outs = outs_ref[...]                                  # (T, BP, HP), zero past lengths
    ht = ht_ref[...]                                      # (BP, HP)  == c_global
    mask = mask_ref[...]                                  # (T, BP, 1), input_seq > 0

    q1 = jnp.dot(outs.reshape(T * BP, HP), a1t_ref[...],
                 preferred_element_type=jnp.float32).reshape(T, BP, HP)
    q2 = jnp.dot(ht, a2t_ref[...], preferred_element_type=jnp.float32)
    sig = jax.nn.sigmoid(q1 + mask * q2[None, :, :])
    alpha = jnp.sum(sig * vt_ref[...], axis=-1, keepdims=True)      # (T, BP, 1)
    c_local = jnp.sum(alpha * outs, axis=0)                         # (BP, HP)
    # ct_dropout: identity at inference.
    cw = (jnp.dot(c_local, bw_ref[0:HP, :], preferred_element_type=jnp.float32)
          + jnp.dot(ht, bw_ref[HP:2 * HP, :], preferred_element_type=jnp.float32))
    cw_ref[...] = cw.astype(cw_ref.dtype)                 # bf16 for the scoring GEMM


# ----------------------------------------------------------------------------
# Kernel 3: item-tiled scoring.  scores_tile = cw @ item_tile^T  (bf16 ops, f32 acc).
def _score_kernel(cw_ref, item_ref, scores_ref):
    scores_ref[...] = jax.lax.dot_general(
        cw_ref[...], item_ref[...],
        dimension_numbers=(((1,), (1,)), ((), ())),
        preferred_element_type=jnp.float32)


# ----------------------------------------------------------------------------
@functools.partial(jax.jit, static_argnums=(3, 4))
def rec_model_forward(params, input_seq, input_lengths, n_items, num_features):
    T, B = input_seq.shape
    emb_tab = params["embedding"]
    H = params["a1_w"].shape[0]
    Din = params["w_ih"].shape[1]

    HP = _round_up(H, 128)        # lane-aligned hidden size
    BP = _round_up(B, 8)          # sublane-aligned batch
    DP = _round_up(Din, 128)      # lane-aligned item-feature size
    item_tile = 128               # raise to 1024-4096 for big catalogs (halve on v7x VMEM)
    NP = _round_up(n_items, item_tile)
    f32 = jnp.float32

    w_ih, w_hh = params["w_ih"], params["w_hh"]          # (3H, Din), (3H, H)
    b_ih, b_hh = params["b_ih"], params["b_hh"]          # (3H,), (3H,)

    # --- fused + padded gate weights; gate g lives in columns [g*HP, g*HP + H) ---------
    wi3 = jnp.zeros((Din, 3 * HP), f32)
    wh3 = jnp.zeros((HP, 3 * HP), f32)
    bi3 = jnp.zeros((1, 3 * HP), f32)
    bh3 = jnp.zeros((1, 3 * HP), f32)
    for g in range(3):
        wi3 = wi3.at[:, g * HP:g * HP + H].set(w_ih[g * H:(g + 1) * H].T)
        wh3 = wh3.at[:H, g * HP:g * HP + H].set(w_hh[g * H:(g + 1) * H].T)
    bi3 = bi3.at[0, 0 * HP:0 * HP + H].set(b_ih[0:H] + b_hh[0:H])              # r
    bi3 = bi3.at[0, 1 * HP:1 * HP + H].set(b_ih[H:2 * H] + b_hh[H:2 * H])      # z
    bi3 = bi3.at[0, 2 * HP:2 * HP + H].set(b_ih[2 * H:3 * H])                  # n (input side)
    bh3 = bh3.at[0, 2 * HP:2 * HP + H].set(b_hh[2 * H:3 * H])                  # n (hidden side)

    # --- embedding + dense features; input projection hoisted out of the recurrence ----
    # (one large GEMM done in XLA; emb_dropout is identity at inference)
    x = add_dense_feature(input_seq, emb_tab[input_seq], num_features, n_items)  # (T, B, Din)
    gi = jnp.dot(x.reshape(T * B, Din), wi3,
                 precision=jax.lax.Precision.HIGHEST) + bi3
    gi = jnp.pad(gi.reshape(T, B, 3 * HP), ((0, 0), (0, BP - B), (0, 0)))

    len_mask = (jnp.arange(T)[:, None] < input_lengths[None, :]).astype(f32)      # (T, B)
    len_mask = jnp.pad(len_mask, ((0, 0), (0, BP - B)))[..., None]                # (T, BP, 1)

    outs, hT = gru_forward(gi, len_mask, wh3, bh3)

    # --- attention + context -> per-batch item-space query cw --------------------------
    item_mask = (input_seq > 0).astype(f32)
    item_mask = jnp.pad(item_mask, ((0, 0), (0, BP - B)))[..., None]              # (T, BP, 1)

    a1t = jnp.zeros((HP, HP), f32).at[:H, :H].set(params["a1_w"].T)
    a2t = jnp.zeros((HP, HP), f32).at[:H, :H].set(params["a2_w"].T)
    vt = jnp.zeros((1, HP), f32).at[0, :H].set(params["vt_w"][0])
    bw = jnp.zeros((2 * HP, DP), f32)
    bw = bw.at[:H, :Din].set(params["b_w"][:H])           # pairs with c_local
    bw = bw.at[HP:HP + H, :Din].set(params["b_w"][H:])    # pairs with c_global (ht)

    cw = pl.pallas_call(
        _attn_context_kernel,
        out_shape=jax.ShapeDtypeStruct((BP, DP), jnp.bfloat16),
        compiler_params=pltpu.CompilerParams(vmem_limit_bytes=32 * 1024 * 1024),
    )(outs, hT, item_mask, a1t, a2t, vt, bw)

    # --- item table (bf16, lane-padded), streamed tile-by-tile through scoring ---------
    item_ids = jnp.arange(n_items, dtype=jnp.int32)
    item_feats = add_dense_feature(item_ids, emb_tab[item_ids], num_features, n_items)
    item_feats = jnp.pad(item_feats,
                         ((0, NP - n_items), (0, DP - Din))).astype(jnp.bfloat16)

    scores = pl.pallas_call(
        _score_kernel,
        out_shape=jax.ShapeDtypeStruct((BP, NP), f32),
        grid=(NP // item_tile,),
        in_specs=[pl.BlockSpec((BP, DP), lambda n: (0, 0)),
                  pl.BlockSpec((item_tile, DP), lambda n: (n, 0))],
        out_specs=pl.BlockSpec((BP, item_tile), lambda n: (0, n)),
        compiler_params=pltpu.CompilerParams(
            dimension_semantics=("parallel",),     # shards item tiles across v7x's 2 TCs
            vmem_limit_bytes=32 * 1024 * 1024),
    )(cw, item_feats)

    return scores[:B, :n_items]


# ----------------------------------------------------------------------------
# Pure-JAX reference (mirrors the PyTorch forward) for the correctness check.
def rec_model_reference(params, input_seq, input_lengths, n_items, num_features):
    T, B = input_seq.shape
    emb_tab = params["embedding"]
    H = params["a1_w"].shape[0]
    w_ih, w_hh, b_ih, b_hh = params["w_ih"], params["w_hh"], params["b_ih"], params["b_hh"]

    x = add_dense_feature(input_seq, emb_tab[input_seq], num_features, n_items)
    len_mask = (jnp.arange(T)[:, None] < input_lengths[None, :]).astype(jnp.float32)[..., None]

    def cell(h, inp):
        x_t, m_t = inp
        gi = x_t @ w_ih.T + b_ih
        gh = h @ w_hh.T + b_hh
        r = jax.nn.sigmoid(gi[:, :H] + gh[:, :H])
        z = jax.nn.sigmoid(gi[:, H:2 * H] + gh[:, H:2 * H])
        n = jnp.tanh(gi[:, 2 * H:] + r * gh[:, 2 * H:])
        h_new = (1.0 - z) * n + z * h
        h_next = m_t * h_new + (1.0 - m_t) * h
        return h_next, m_t * h_new

    h0 = jnp.zeros((B, H), jnp.float32)
    hT, outs = jax.lax.scan(cell, h0, (x, len_mask))

    outs_b = jnp.transpose(outs, (1, 0, 2))                              # (B, T, H)
    q1 = (outs_b.reshape(-1, H) @ params["a1_w"].T).reshape(B, T, H)
    q2 = hT @ params["a2_w"].T
    mask = (input_seq.T > 0).astype(jnp.float32)                         # (B, T)
    q2_masked = mask[..., None] * q2[:, None, :]
    alpha = (jax.nn.sigmoid(q1 + q2_masked).reshape(-1, H) @ params["vt_w"].T).reshape(B, T)
    c_local = jnp.sum(alpha[..., None] * outs_b, axis=1)
    c_t = jnp.concatenate([c_local, hT], axis=1)

    item_ids = jnp.arange(n_items, dtype=jnp.int32)
    item_feats = add_dense_feature(item_ids, emb_tab[item_ids], num_features, n_items)
    B_mat = item_feats @ params["b_w"].T                                 # (N, 2H)
    return c_t @ B_mat.T


def init_params(key, n_items, emb_dim, num_features, hidden):
    Din = emb_dim + num_features
    ks = jax.random.split(key, 9)
    nrm = lambda k, s: (0.1 * jax.random.normal(k, s, jnp.float32))
    emb = nrm(ks[0], (n_items, emb_dim)).at[0].set(0.0)                  # padding_idx=0
    return {
        "embedding": emb,
        "w_ih": nrm(ks[1], (3 * hidden, Din)),
        "w_hh": nrm(ks[2], (3 * hidden, hidden)),
        "b_ih": nrm(ks[3], (3 * hidden,)),
        "b_hh": nrm(ks[4], (3 * hidden,)),
        "a1_w": nrm(ks[5], (hidden, hidden)),
        "a2_w": nrm(ks[6], (hidden, hidden)),
        "vt_w": nrm(ks[7], (1, hidden)),
        "b_w": nrm(ks[8], (2 * hidden, Din)),
    }


if __name__ == "__main__":
    T, B = 8, 4
    n_items = 300          # pads to 384 -> 3 item tiles of 128
    emb_dim = 28
    num_features = 4
    hidden = 32

    key = jax.random.PRNGKey(0)
    k_param, k_seq = jax.random.split(key)

    # Lengths sorted descending (pack_padded_sequence contract); pads are item id 0.
    lengths = jnp.array([8, 6, 5, 3], dtype=jnp.int32)
    seq = jax.random.randint(k_seq, (T, B), 1, n_items, dtype=jnp.int32)
    input_seq = jnp.where(jnp.arange(T)[:, None] < lengths[None, :], seq, 0)

    params = init_params(k_param, n_items, emb_dim, num_features, hidden)

    scores = rec_model_forward(params, input_seq, lengths, n_items, num_features)
    scores = jax.block_until_ready(scores)

    with jax.default_matmul_precision("highest"):
        ref = rec_model_reference(params, input_seq, lengths, n_items, num_features)
        ref = jax.block_until_ready(ref)

    assert scores.shape == (B, n_items), scores.shape
    assert bool(jnp.all(jnp.isfinite(scores)))
    err = float(np.max(np.abs(np.asarray(scores) - np.asarray(ref))))
    # Slightly relaxed tolerance: scoring GEMM uses bf16 operands (f32 accumulation).
    assert np.allclose(np.asarray(scores), np.asarray(ref), atol=2e-2, rtol=2e-2), err
    print("KERNEL_OK")
</pallas_src>

<mosaic_0001>
module attributes {stable_mosaic.version = 11 : i64} {
  func.func @_gru_kernel(%arg0: memref<8x8x384xf32, #tpu.memory_space<vmem>>, %arg1: memref<8x8x1xf32, #tpu.memory_space<vmem>>, %arg2: memref<128x384xf32, #tpu.memory_space<vmem>>, %arg3: memref<1x384xf32, #tpu.memory_space<vmem>>, %arg4: memref<8x8x128xf32, #tpu.memory_space<vmem>>, %arg5: memref<8x128xf32, #tpu.memory_space<vmem>>, %arg6: memref<8x128xf32, #tpu.memory_space<vmem>>) attributes {dimension_semantics = [], scalar_prefetch = 0 : i64, scratch_operands = 1 : i64, tpu.core_type = #tpu.core_type<tc>} {
    %cst = arith.constant 0.000000e+00 : f32
    %0 = vector.broadcast %cst : f32 to vector<8x128xf32>
    %c0 = arith.constant 0 : index
    %c0_0 = arith.constant 0 : index
    %1 = vector.load %arg6[%c0, %c0_0] : memref<8x128xf32, #tpu.memory_space<vmem>>, vector<8x128xf32>
    tpu.vector_store %arg6[%c0, %c0_0], %0 {strides = array<i32>} : memref<8x128xf32, #tpu.memory_space<vmem>>, vector<8x128xf32>,
    %c0_i32 = arith.constant 0 : i32
    %c8_i32 = arith.constant 8 : i32
    %2 = arith.addi %c0_i32, %c8_i32 : i32
    %c1_i32 = arith.constant 1 : i32
    scf.for %arg7 = %c0_i32 to %2 step %c1_i32  : i32 {
      %c1_i32_6 = arith.constant 1 : i32
      %5 = arith.muli %arg7, %c1_i32_6 : i32
      %c0_i32_7 = arith.constant 0 : i32
      %6 = arith.addi %c0_i32_7, %5 : i32
      %c0_8 = arith.constant 0 : index
      %c0_9 = arith.constant 0 : index
      %7 = vector.load %arg6[%c0_8, %c0_9] : memref<8x128xf32, #tpu.memory_space<vmem>>, vector<8x128xf32>
      %8 = arith.index_cast %6 : i32 to index
      %c0_10 = arith.constant 0 : index
      %c0_11 = arith.constant 0 : index
      %9 = vector.load %arg0[%8, %c0_10, %c0_11] : memref<8x8x384xf32, #tpu.memory_space<vmem>>, vector<1x8x384xf32>
      %10 = vector.shape_cast %9 : vector<1x8x384xf32> to vector<8x384xf32>
      %11 = arith.index_cast %6 : i32 to index
      %c0_12 = arith.constant 0 : index
      %c0_13 = arith.constant 0 : index
      %12 = vector.load %arg1[%11, %c0_12, %c0_13] : memref<8x8x1xf32, #tpu.memory_space<vmem>>, vector<1x8x1xf32>
      %13 = vector.shape_cast %12 : vector<1x8x1xf32> to vector<8x1xf32>
      %c0_14 = arith.constant 0 : index
      %c0_15 = arith.constant 0 : index
      %14 = vector.load %arg2[%c0_14, %c0_15] : memref<128x384xf32, #tpu.memory_space<vmem>>, vector<128x384xf32>
      %cst_16 = arith.constant dense<0.000000e+00> : vector<8x384xf32>
      %15 = tpu.matmul %7, %14, %cst_16 {dimension_numbers = #tpu.dot_dimension_numbers<[1], [0], [0], [1], [0, 0, 1, 1], [], []>} : vector<8x128xf32>, vector<128x384xf32>, vector<8x384xf32> -> vector<8x384xf32>
      %c0_17 = arith.constant 0 : index
      %c0_18 = arith.constant 0 : index
      %16 = vector.load %arg3[%c0_17, %c0_18] : memref<1x384xf32, #tpu.memory_space<vmem>>, vector<1x384xf32>
      %17 = vector.broadcast %16 : vector<1x384xf32> to vector<8x384xf32>
      %18 = arith.addf %15, %17 : vector<8x384xf32>
      %19 = vector.extract_strided_slice %10 {offsets = [0, 0], sizes = [8, 128], strides = [1, 1]} : vector<8x384xf32> to vector<8x128xf32>
      %20 = vector.extract_strided_slice %18 {offsets = [0, 0], sizes = [8, 128], strides = [1, 1]} : vector<8x384xf32> to vector<8x128xf32>
      %21 = arith.addf %19, %20 : vector<8x128xf32>
      %22 = arith.negf %21 : vector<8x128xf32>
      %23 = math.exp %22 : vector<8x128xf32>
      %cst_19 = arith.constant 1.000000e+00 : f32
      %24 = vector.broadcast %cst_19 : f32 to vector<8x128xf32>
      %25 = arith.addf %24, %23 : vector<8x128xf32>
      %26 = arith.divf %24, %25 : vector<8x128xf32>
      %27 = vector.extract_strided_slice %10 {offsets = [0, 128], sizes = [8, 128], strides = [1, 1]} : vector<8x384xf32> to vector<8x128xf32>
      %28 = vector.extract_strided_slice %18 {offsets = [0, 128], sizes = [8, 128], strides = [1, 1]} : vector<8x384xf32> to vector<8x128xf32>
      %29 = arith.addf %27, %28 : vector<8x128xf32>
      %30 = arith.negf %29 : vector<8x128xf32>
      %31 = math.exp %30 : vector<8x128xf32>
      %cst_20 = arith.constant 1.000000e+00 : f32
      %32 = vector.broadcast %cst_20 : f32 to vector<8x128xf32>
      %33 = arith.addf %32, %31 : vector<8x128xf32>
      %34 = arith.divf %32, %33 : vector<8x128xf32>
      %35 = vector.extract_strided_slice %10 {offsets = [0, 256], sizes = [8, 128], strides = [1, 1]} : vector<8x384xf32> to vector<8x128xf32>
      %36 = vector.extract_strided_slice %18 {offsets = [0, 256], sizes = [8, 128], strides = [1, 1]} : vector<8x384xf32> to vector<8x128xf32>
      %37 = arith.mulf %26, %36 : vector<8x128xf32>
      %38 = arith.addf %35, %37 : vector<8x128xf32>
      %39 = math.tanh %38 : vector<8x128xf32>
      %cst_21 = arith.constant 1.000000e+00 : f32
      %40 = vector.broadcast %cst_21 : f32 to vector<8x128xf32>
      %41 = arith.subf %40, %34 : vector<8x128xf32>
      %42 = arith.mulf %41, %39 : vector<8x128xf32>
      %43 = arith.mulf %34, %7 : vector<8x128xf32>
      %44 = arith.addf %42, %43 : vector<8x128xf32>
      %45 = vector.broadcast %13 : vector<8x1xf32> to vector<8x128xf32>
      %46 = arith.mulf %45, %44 : vector<8x128xf32>
      %47 = arith.index_cast %6 : i32 to index
      %c0_22 = arith.constant 0 : index
      %c0_23 = arith.constant 0 : index
      %48 = vector.load %arg4[%47, %c0_22, %c0_23] : memref<8x8x128xf32, #tpu.memory_space<vmem>>, vector<1x8x128xf32>
      %49 = vector.shape_cast %48 : vector<1x8x128xf32> to vector<8x128xf32>
      %50 = vector.shape_cast %46 : vector<8x128xf32> to vector<1x8x128xf32>
      tpu.vector_store %arg4[%47, %c0_22, %c0_23], %50 {strides = array<i32>} : memref<8x8x128xf32, #tpu.memory_space<vmem>>, vector<1x8x128xf32>,
      %51 = vector.broadcast %13 : vector<8x1xf32> to vector<8x128xf32>
      %52 = arith.mulf %51, %44 : vector<8x128xf32>
      %cst_24 = arith.constant 1.000000e+00 : f32
      %53 = vector.broadcast %cst_24 : f32 to vector<8x1xf32>
      %54 = arith.subf %53, %13 : vector<8x1xf32>
      %55 = vector.broadcast %54 : vector<8x1xf32> to vector<8x128xf32>
      %56 = arith.mulf %55, %7 : vector<8x128xf32>
      %57 = arith.addf %52, %56 : vector<8x128xf32>
      %c0_25 = arith.constant 0 : index
      %c0_26 = arith.constant 0 : index
      %58 = vector.load %arg6[%c0_25, %c0_26] : memref<8x128xf32, #tpu.memory_space<vmem>>, vector<8x128xf32>
      tpu.vector_store %arg6[%c0_25, %c0_26], %57 {strides = array<i32>} : memref<8x128xf32, #tpu.memory_space<vmem>>, vector<8x128xf32>,
    }
    %c8_i32_1 = arith.constant 8 : i32
    %c0_2 = arith.constant 0 : index
    %c0_3 = arith.constant 0 : index
    %3 = vector.load %arg6[%c0_2, %c0_3] : memref<8x128xf32, #tpu.memory_space<vmem>>, vector<8x128xf32>
    %c0_4 = arith.constant 0 : index
    %c0_5 = arith.constant 0 : index
    %4 = vector.load %arg5[%c0_4, %c0_5] : memref<8x128xf32, #tpu.memory_space<vmem>>, vector<8x128xf32>
    tpu.vector_store %arg5[%c0_4, %c0_5], %3 {strides = array<i32>} : memref<8x128xf32, #tpu.memory_space<vmem>>, vector<8x128xf32>,
    return
  }
}

module attributes {stable_mosaic.version = 11 : i64} {
  func.func @_attn_context_kernel(%arg0: memref<8x8x128xf32, #tpu.memory_space<vmem>>, %arg1: memref<8x128xf32, #tpu.memory_space<vmem>>, %arg2: memref<8x8x1xf32, #tpu.memory_space<vmem>>, %arg3: memref<128x128xf32, #tpu.memory_space<vmem>>, %arg4: memref<128x128xf32, #tpu.memory_space<vmem>>, %arg5: memref<1x128xf32, #tpu.memory_space<vmem>>, %arg6: memref<256x128xf32, #tpu.memory_space<vmem>>, %arg7: memref<8x128xbf16, #tpu.memory_space<vmem>>) attributes {dimension_semantics = [], scalar_prefetch = 0 : i64, scratch_operands = 0 : i64, tpu.core_type = #tpu.core_type<tc>} {
    %c0 = arith.constant 0 : index
    %c0_0 = arith.constant 0 : index
    %c0_1 = arith.constant 0 : index
    %0 = vector.load %arg0[%c0, %c0_0, %c0_1] : memref<8x8x128xf32, #tpu.memory_space<vmem>>, vector<8x8x128xf32>
    %c0_2 = arith.constant 0 : index
    %c0_3 = arith.constant 0 : index
    %1 = vector.load %arg1[%c0_2, %c0_3] : memref<8x128xf32, #tpu.memory_space<vmem>>, vector<8x128xf32>
    %c0_4 = arith.constant 0 : index
    %c0_5 = arith.constant 0 : index
    %c0_6 = arith.constant 0 : index
    %2 = vector.load %arg2[%c0_4, %c0_5, %c0_6] : memref<8x8x1xf32, #tpu.memory_space<vmem>>, vector<8x8x1xf32>
    %3 = vector.shape_cast %0 : vector<8x8x128xf32> to vector<64x128xf32>
    %c0_7 = arith.constant 0 : index
    %c0_8 = arith.constant 0 : index
    %4 = vector.load %arg3[%c0_7, %c0_8] : memref<128x128xf32, #tpu.memory_space<vmem>>, vector<128x128xf32>
    %cst = arith.constant dense<0.000000e+00> : vector<64x128xf32>
    %5 = tpu.matmul %3, %4, %cst {dimension_numbers = #tpu.dot_dimension_numbers<[1], [0], [0], [1], [0, 0, 1, 1], [], []>} : vector<64x128xf32>, vector<128x128xf32>, vector<64x128xf32> -> vector<64x128xf32>
    %6 = vector.shape_cast %5 : vector<64x128xf32> to vector<8x8x128xf32>
    %c0_9 = arith.constant 0 : index
    %c0_10 = arith.constant 0 : index
    %7 = vector.load %arg4[%c0_9, %c0_10] : memref<128x128xf32, #tpu.memory_space<vmem>>, vector<128x128xf32>
    %cst_11 = arith.constant dense<0.000000e+00> : vector<8x128xf32>
    %8 = tpu.matmul %1, %7, %cst_11 {dimension_numbers = #tpu.dot_dimension_numbers<[1], [0], [0], [1], [0, 0, 1, 1], [], []>} : vector<8x128xf32>, vector<128x128xf32>, vector<8x128xf32> -> vector<8x128xf32>
    %9 = vector.shape_cast %8 : vector<8x128xf32> to vector<1x8x128xf32>
    %10 = vector.broadcast %2 : vector<8x8x1xf32> to vector<8x8x128xf32>
    %11 = vector.broadcast %9 : vector<1x8x128xf32> to vector<8x8x128xf32>
    %12 = arith.mulf %10, %11 : vector<8x8x128xf32>
    %13 = arith.addf %6, %12 : vector<8x8x128xf32>
    %14 = arith.negf %13 : vector<8x8x128xf32>
    %15 = math.exp %14 : vector<8x8x128xf32>
    %cst_12 = arith.constant 1.000000e+00 : f32
    %16 = vector.broadcast %cst_12 : f32 to vector<8x8x128xf32>
    %17 = arith.addf %16, %15 : vector<8x8x128xf32>
    %18 = arith.divf %16, %17 : vector<8x8x128xf32>
    %c0_13 = arith.constant 0 : index
    %c0_14 = arith.constant 0 : index
    %19 = vector.load %arg5[%c0_13, %c0_14] : memref<1x128xf32, #tpu.memory_space<vmem>>, vector<1x128xf32>
    %20 = vector.shape_cast %19 : vector<1x128xf32> to vector<1x1x128xf32>
    %21 = vector.broadcast %20 : vector<1x1x128xf32> to vector<8x8x128xf32>
    %22 = arith.mulf %18, %21 : vector<8x8x128xf32>
    %cst_15 = arith.constant dense<0.000000e+00> : vector<8x8xf32>
    %23 = vector.multi_reduction <add>, %22, %cst_15 [2] : vector<8x8x128xf32> to vector<8x8xf32>
    %24 = vector.shape_cast %23 : vector<8x8xf32> to vector<8x8x1xf32>
    %25 = vector.broadcast %24 : vector<8x8x1xf32> to vector<8x8x128xf32>
    %26 = arith.mulf %25, %0 : vector<8x8x128xf32>
    %cst_16 = arith.constant dense<0.000000e+00> : vector<8x128xf32>
    %27 = vector.multi_reduction <add>, %26, %cst_16 [0] : vector<8x8x128xf32> to vector<8x128xf32>
    %c0_17 = arith.constant 0 : index
    %c0_18 = arith.constant 0 : index
    %28 = vector.load %arg6[%c0_17, %c0_18] : memref<256x128xf32, #tpu.memory_space<vmem>>, vector<128x128xf32>
    %cst_19 = arith.constant dense<0.000000e+00> : vector<8x128xf32>
    %29 = tpu.matmul %27, %28, %cst_19 {dimension_numbers = #tpu.dot_dimension_numbers<[1], [0], [0], [1], [0, 0, 1, 1], [], []>} : vector<8x128xf32>, vector<128x128xf32>, vector<8x128xf32> -> vector<8x128xf32>
    %c128 = arith.constant 128 : index
    %c0_20 = arith.constant 0 : index
    %30 = vector.load %arg6[%c128, %c0_20] : memref<256x128xf32, #tpu.memory_space<vmem>>, vector<128x128xf32>
    %cst_21 = arith.constant dense<0.000000e+00> : vector<8x128xf32>
    %31 = tpu.matmul %1, %30, %cst_21 {dimension_numbers = #tpu.dot_dimension_numbers<[1], [0], [0], [1], [0, 0, 1, 1], [], []>} : vector<8x128xf32>, vector<128x128xf32>, vector<8x128xf32> -> vector<8x128xf32>
    %32 = arith.addf %29, %31 : vector<8x128xf32>
    %33 = arith.truncf %32 : vector<8x128xf32> to vector<8x128xbf16>
    %c0_22 = arith.constant 0 : index
    %c0_23 = arith.constant 0 : index
    %34 = vector.load %arg7[%c0_22, %c0_23] : memref<8x128xbf16, #tpu.memory_space<vmem>>, vector<8x128xbf16>
    tpu.vector_store %arg7[%c0_22, %c0_23], %33 {strides = array<i32>} : memref<8x128xbf16, #tpu.memory_space<vmem>>, vector<8x128xbf16>,
    return
  }
}

module attributes {stable_mosaic.version = 11 : i64} {
  func.func @_score_kernel(%arg0: i32, %arg1: memref<8x128xbf16, #tpu.memory_space<vmem>>, %arg2: memref<128x128xbf16, #tpu.memory_space<vmem>>, %arg3: memref<8x128xf32, #tpu.memory_space<vmem>>) attributes {dimension_semantics = [#tpu.dimension_semantics<parallel>], iteration_bounds = array<i64: 3>, scalar_prefetch = 0 : i64, scratch_operands = 0 : i64, tpu.core_type = #tpu.core_type<tc>, window_params = [{pipeline_mode = #tpu.pipeline_mode<synchronous>, transform_indices = @transform_0, window_bounds = array<i64: 8, 128>}, {transform_indices = @transform_1, window_bounds = array<i64: 128, 128>}, {transform_indices = @transform_2, window_bounds = array<i64: 8, 128>}]} {
    %c0 = arith.constant 0 : index
    %c0_0 = arith.constant 0 : index
    %0 = vector.load %arg1[%c0, %c0_0] : memref<8x128xbf16, #tpu.memory_space<vmem>>, vector<8x128xbf16>
    %c0_1 = arith.constant 0 : index
    %c0_2 = arith.constant 0 : index
    %1 = vector.load %arg2[%c0_1, %c0_2] : memref<128x128xbf16, #tpu.memory_space<vmem>>, vector<128x128xbf16>
    %cst = arith.constant dense<0.000000e+00> : vector<8x128xf32>
    %2 = tpu.matmul %0, %1, %cst {dimension_numbers = #tpu.dot_dimension_numbers<[1], [1], [0], [0], [0, 0, 1, 0], [], []>} : vector<8x128xbf16>, vector<128x128xbf16>, vector<8x128xf32> -> vector<8x128xf32>
    %c0_3 = arith.constant 0 : index
    %c0_4 = arith.constant 0 : index
    %3 = vector.load %arg3[%c0_3, %c0_4] : memref<8x128xf32, #tpu.memory_space<vmem>>, vector<8x128xf32>
    tpu.vector_store %arg3[%c0_3, %c0_4], %2 {strides = array<i32>} : memref<8x128xf32, #tpu.memory_space<vmem>>, vector<8x128xf32>,
    return
  }
  func.func @transform_0(%arg0: i32) -> (i32, i32) {
    %c0_i32 = arith.constant 0 : i32
    %c0_i32_0 = arith.constant 0 : i32
    %c0_i32_1 = arith.constant 0 : i32
    return %c0_i32, %c0_i32_0 : i32, i32
  }
  func.func @transform_1(%arg0: i32) -> (i32, i32) {
    %c0_i32 = arith.constant 0 : i32
    %c0_i32_0 = arith.constant 0 : i32
    return %arg0, %c0_i32 : i32, i32
  }
  func.func @transform_2(%arg0: i32) -> (i32, i32) {
    %c0_i32 = arith.constant 0 : i32
    %c0_i32_0 = arith.constant 0 : i32
    return %c0_i32, %arg0 : i32, i32
  }
}

</mosaic_0001>

<bundles_post_ra>
// kernel: rec_model_forward.4
= control target key start
LH: loop header
LB: loop body
LE: loop exit
PB: predicated region body
PF: predicated region fallthrough
CT: control target
= control target key end

     0   :  { %v848_v0 = vmov 0.0   ;;  %vm849_vm0 = vmmov 0   ;;  %v850_v40 = vmov 0   ;;  %s1230_s3 = inlined_call_operand.vmem [shape: f32[128,128], index: 3, kind: input, shape index: {}]   ;;  %s1231_s4 = inlined_call_operand.vmem [shape: f32[128,128], index: 4, kind: input, shape index: {}]   ;;  %s1232_s0 = inlined_call_operand.vmem [shape: f32[8,8,128], index: 0, kind: input, shape index: {}]   ;;  %s1233_s1 = inlined_call_operand.vmem [shape: f32[8,128], index: 1, kind: input, shape index: {}]   ;;  %s1234_s2 = inlined_call_operand.vmem [shape: f32[8,8,1], index: 2, kind: input, shape index: {}]   ;;  %s1235_s6 = inlined_call_operand.vmem [shape: f32[256,128], index: 6, kind: input, shape index: {}]   ;;  %s1236_s5 = inlined_call_operand.vmem [shape: f32[1,128], index: 5, kind: input, shape index: {}]   ;;  %s1237_s7 = inlined_call_operand.vmem [shape: bf16[8,128], index: 7, kind: output, shape index: {}]  }
   0x1   :  { %706 = vmatprep.subr.mxu1 %v848_v0  ;;  %v58_v1 = vld [vmem:[%s1230_s3 + $0x78] sm:$0xff]  ;;  %v57_v3 = vld [vmem:[%s1230_s3 + $0x70] sm:$0xff]  ;;  %738 = vmatprep.mubr.msk.f32.mxu1 %vm849_vm0, %v848_v0  ;;  %v56_v5 = vld [vmem:[%s1230_s3 + $0x68] sm:$0xff] }
   0x2   :  { %v179_v2 = vld [vmem:[%s1231_s4 + $0x78] sm:$0xff]  ;;  %662 = vmatprep.subr.mxu0 %v58_v1  ;;  %v178_v4 = vld [vmem:[%s1231_s4 + $0x70] sm:$0xff]  ;;  %v177_v6 = vld [vmem:[%s1231_s4 + $0x68] sm:$0xff]  ;;  %815 = vset.pattern.permute.xlu1 %v850_v40 }
   0x3   :  { %707 = vmatpush3.msra.mxu1 %v179_v2  ;;  %663 = vmatpush3.msra.mxu0 %v58_v1  ;;  %v55_v7 = vld [vmem:[%s1230_s3 + $0x60] sm:$0xff]  ;;  %v54_v9 = vld [vmem:[%s1230_s3 + $0x58] sm:$0xff]  ;;  %v53_v11 = vld [vmem:[%s1230_s3 + $0x50] sm:$0xff] }
   0x4   :  { %708 = vmatprep.subr.mxu1 %v848_v0  ;;  %664 = vmatprep.subr.mxu0 %v57_v3  ;;  %v176_v8 = vld [vmem:[%s1231_s4 + $0x60] sm:$0xff]  ;;  %v175_v10 = vld [vmem:[%s1231_s4 + $0x58] sm:$0xff]  ;;  %v174_v12 = vld [vmem:[%s1231_s4 + $0x50] sm:$0xff] }
   0x5   :  { %709 = vmatpush3.msra.mxu1 %v178_v4  ;;  %665 = vmatpush3.msra.mxu0 %v57_v3  ;;  %v52_v13 = vld [vmem:[%s1230_s3 + $0x48] sm:$0xff]  ;;  %v51_v15 = vld [vmem:[%s1230_s3 + $0x40] sm:$0xff]  ;;  %v50_v17 = vld [vmem:[%s1230_s3 + $0x38] sm:$0xff] }
   0x6   :  { %710 = vmatprep.subr.mxu1 %v848_v0  ;;  %666 = vmatprep.subr.mxu0 %v56_v5  ;;  %v173_v14 = vld [vmem:[%s1231_s4 + $0x48] sm:$0xff]  ;;  %v172_v16 = vld [vmem:[%s1231_s4 + $0x40] sm:$0xff]  ;;  %v171_v18 = vld [vmem:[%s1231_s4 + $0x38] sm:$0xff] }
   0x7   :  { %711 = vmatpush3.msra.mxu1 %v177_v6  ;;  %667 = vmatpush3.msra.mxu0 %v56_v5  ;;  %v49_v19 = vld [vmem:[%s1230_s3 + $0x30] sm:$0xff]  ;;  %v48_v21 = vld [vmem:[%s1230_s3 + $0x28] sm:$0xff]  ;;  %v47_v23 = vld [vmem:[%s1230_s3 + $0x20] sm:$0xff] }
   0x8   :  { %712 = vmatprep.subr.mxu1 %v848_v0  ;;  %668 = vmatprep.subr.mxu0 %v55_v7  ;;  %v170_v20 = vld [vmem:[%s1231_s4 + $0x30] sm:$0xff]  ;;  %v169_v22 = vld [vmem:[%s1231_s4 + $0x28] sm:$0xff]  ;;  %v168_v24 = vld [vmem:[%s1231_s4 + $0x20] sm:$0xff] }
   0x9   :  { %713 = vmatpush3.msra.mxu1 %v176_v8  ;;  %669 = vmatpush3.msra.mxu0 %v55_v7  ;;  %v46_v25 = vld [vmem:[%s1230_s3 + $0x18] sm:$0xff]  ;;  %v45_v27 = vld [vmem:[%s1230_s3 + $0x10] sm:$0xff]  ;;  %v44_v29 = vld [vmem:[%s1230_s3 + $0x8] sm:$0xff] }
   0xa   :  { %714 = vmatprep.subr.mxu1 %v848_v0  ;;  %670 = vmatprep.subr.mxu0 %v54_v9  ;;  %v167_v26 = vld [vmem:[%s1231_s4 + $0x18] sm:$0xff]  ;;  %v166_v28 = vld [vmem:[%s1231_s4 + $0x10] sm:$0xff]  ;;  %v165_v30 = vld [vmem:[%s1231_s4 + $0x8] sm:$0xff] }
   0xb   :  { %715 = vmatpush3.msra.mxu1 %v175_v10  ;;  %671 = vmatpush3.msra.mxu0 %v54_v9  ;;  %v43_v31 = vld [vmem:[%s1230_s3] sm:$0xff]  ;;  %v1018_v35 = vld [vmem:[%s1232_s0 + $0x8] sm:$0xff]  ;;  %v1023_v36 = vld [vmem:[%s1232_s0 + $0x10] sm:$0xff] }
   0xc   :  { %716 = vmatprep.subr.mxu1 %v848_v0  ;;  %672 = vmatprep.subr.mxu0 %v53_v11  ;;  %v164_v32 = vld [vmem:[%s1231_s4] sm:$0xff]  ;;  %v37_v37 = vld [vmem:[%s1234_s2 + $0x10] sm:$0xff]  ;;  %v1038_v39 = vld [vmem:[%s1232_s0 + $0x18] sm:$0xff] }
   0xd   :  { %717 = vmatpush3.msra.mxu1 %v174_v12  ;;  %673 = vmatpush3.msra.mxu0 %v53_v11  ;;  %v1007_v33 = vld [vmem:[%s1232_s0] sm:$0xff]  ;;  %v38_v42 = vld [vmem:[%s1234_s2 + $0x18] sm:$0xff]  ;;  %v36_v43 = vld [vmem:[%s1234_s2 + $0x8] sm:$0xff] }
   0xe   :  { %718 = vmatprep.subr.mxu1 %v848_v0  ;;  %674 = vmatprep.subr.mxu0 %v52_v13  ;;  %v1013_v34 = vld [vmem:[%s1233_s1] sm:$0xff]  ;;  %v1058_v44 = vld [vmem:[%s1232_s0 + $0x28] sm:$0xff]  ;;  %v1065_v45 = vld [vmem:[%s1232_s0 + $0x30] sm:$0xff] }
   0xf   :  { %719 = vmatpush3.msra.mxu1 %v173_v14  ;;  %675 = vmatpush3.msra.mxu0 %v52_v13  ;;  %v35_v38 = vld [vmem:[%s1234_s2] sm:$0xff]  ;;  %v40_v46 = vld [vmem:[%s1234_s2 + $0x28] sm:$0xff]  ;;  %v1078_v48 = vld [vmem:[%s1232_s0 + $0x38] sm:$0xff] }
  0x10   :  { %720 = vmatprep.subr.mxu1 %v848_v0  ;;  %676 = vmatprep.subr.mxu0 %v51_v15  ;;  %v1043_v41 = vld [vmem:[%s1232_s0 + $0x20] sm:$0xff]  ;;  %v42_v49 = vld [vmem:[%s1234_s2 + $0x38] sm:$0xff]  ;;  %v41_v50 = vld [vmem:[%s1234_s2 + $0x30] sm:$0xff] }
  0x11   :  { %721 = vmatpush3.msra.mxu1 %v172_v16  ;;  %677 = vmatpush3.msra.mxu0 %v51_v15  ;;  %v39_v47 = vld [vmem:[%s1234_s2 + $0x20] sm:$0xff]  ;;  %v431_v51 = vld [vmem:[%s1235_s6 + $0xf8] sm:$0xff]  ;;  %v430_v52 = vld [vmem:[%s1235_s6 + $0xf0] sm:$0xff] }
  0x12   :  { %722 = vmatprep.subr.mxu1 %v848_v0  ;;  %678 = vmatprep.subr.mxu0 %v50_v17  ;;  %v415_v53 = vld [vmem:[%s1235_s6 + $0x78] sm:$0xff]  ;;  %v414_v54 = vld [vmem:[%s1235_s6 + $0x70] sm:$0xff]  ;;  %v429_v55 = vld [vmem:[%s1235_s6 + $0xe8] sm:$0xff] }
  0x13   :  { %723 = vmatpush3.msra.mxu1 %v171_v18  ;;  %679 = vmatpush3.msra.mxu0 %v50_v17  ;;  %v413_v56 = vld [vmem:[%s1235_s6 + $0x68] sm:$0xff]  ;;  %v428_v57 = vld [vmem:[%s1235_s6 + $0xe0] sm:$0xff]  ;;  %v427_v59 = vld [vmem:[%s1235_s6 + $0xd8] sm:$0xff] }
  0x14   :  { %724 = vmatprep.subr.mxu1 %v848_v0  ;;  %680 = vmatprep.subr.mxu0 %v49_v19  ;;  %v412_v58 = vld [vmem:[%s1235_s6 + $0x60] sm:$0xff]  ;;  %v411_v60 = vld [vmem:[%s1235_s6 + $0x58] sm:$0xff]  ;;  %v426_v61 = vld [vmem:[%s1235_s6 + $0xd0] sm:$0xff] }
  0x15   :  { %725 = vmatpush3.msra.mxu1 %v170_v20  ;;  %681 = vmatpush3.msra.mxu0 %v49_v19 }
  0x16   :  { %726 = vmatprep.subr.mxu1 %v848_v0  ;;  %682 = vmatprep.subr.mxu0 %v48_v21 }
  0x17   :  { %727 = vmatpush3.msra.mxu1 %v169_v22  ;;  %683 = vmatpush3.msra.mxu0 %v48_v21 }
  0x18   :  { %728 = vmatprep.subr.mxu1 %v848_v0  ;;  %684 = vmatprep.subr.mxu0 %v47_v23 }
  0x19   :  { %729 = vmatpush3.msra.mxu1 %v168_v24  ;;  %685 = vmatpush3.msra.mxu0 %v47_v23 }
  0x1a   :  { %730 = vmatprep.subr.mxu1 %v848_v0  ;;  %686 = vmatprep.subr.mxu0 %v46_v25 }
  0x1b   :  { %731 = vmatpush3.msra.mxu1 %v167_v26  ;;  %687 = vmatpush3.msra.mxu0 %v46_v25 }
  0x1c   :  { %732 = vmatprep.subr.mxu1 %v848_v0  ;;  %688 = vmatprep.subr.mxu0 %v45_v27 }
  0x1d   :  { %733 = vmatpush3.msra.mxu1 %v166_v28  ;;  %689 = vmatpush3.msra.mxu0 %v45_v27 }
  0x1e   :  { %734 = vmatprep.subr.mxu1 %v848_v0  ;;  %690 = vmatprep.subr.mxu0 %v44_v29 }
  0x1f   :  { %735 = vmatpush3.msra.mxu1 %v165_v30  ;;  %691 = vmatpush3.msra.mxu0 %v44_v29 }
  0x20   :  { %736 = vmatprep.subr.mxu1 %v848_v0  ;;  %692 = vmatprep.subr.mxu0 %v43_v31 }
  0x21   :  { %737 = vmatpush3.msra.mxu1 %v164_v32  ;;  %693 = vmatpush3.msra.mxu0 %v43_v31 }
  0x22   :  { %694 = vmatprep.mubr.f32.mxu0 %v1007_v33  ;;  %739 = vmatmul.mubr.f32.vlgmr.msra.gmra.mxu1 %v1013_v34 }
  0x23   :  { %695 = vmatmul.mubr.f32.vlgmr.msra.gmra.mxu0 %v1018_v35  ;;  %814 = vset.pattern.permute.xlu0 %v850_v40 }
  0x24   :  { %697 = vmatprep.mubr.f32.mxu0 %v1023_v36  ;;  %262 = vperm.xlu1 %815, %v37_v37  }
  0x25   :  { %252 = vperm.xlu0 %814, %v35_v38   ;;  %741 = vmatprep.subr.mxu0 %v848_v0 }
  0x26   :  { %776 = vmatprep.subr.mxu1 %v848_v0  ;;  %808 = vmatprep.mubr.msk.f32.mxu1 %vm849_vm0, %v848_v0 }
  0x27   :  { %698 = vmatmul.mubr.f32.gmra.mxu0 %v1038_v39  ;;  %777 = vmatpush3.msra.mxu1 %v415_v53 }
  0x28   :  { %700 = vmatprep.mubr.f32.mxu0 %v1043_v41  ;;  %267 = vperm.xlu1 %815, %v38_v42  }
  0x29   :  { %257 = vperm.xlu0 %814, %v36_v43   ;;  %742 = vmatpush3.msra.mxu0 %v431_v51 }
  0x2a   :  { %743 = vmatprep.subr.mxu0 %v848_v0  ;;  %778 = vmatprep.subr.mxu1 %v848_v0 }
  0x2b   :  { %701 = vmatmul.mubr.f32.gmra.mxu0 %v1058_v44  ;;  %779 = vmatpush3.msra.mxu1 %v414_v54 }
  0x2c   :  { %703 = vmatprep.mubr.f32.mxu0 %v1065_v45  ;;  %277 = vperm.xlu1 %815, %v40_v46  }
  0x2d   :  { %272 = vperm.xlu0 %814, %v39_v47   ;;  %744 = vmatpush3.msra.mxu0 %v430_v52 }
  0x2e   :  { %745 = vmatprep.subr.mxu0 %v848_v0  ;;  %780 = vmatprep.subr.mxu1 %v848_v0 }
  0x2f   :  { %704 = vmatmul.mubr.f32.gmra.mxu0 %v1078_v48  ;;  %781 = vmatpush3.msra.mxu1 %v413_v56 }
  0x30   :  { %773 = vmatprep.mubr.msk.f32.mxu0 %vm849_vm0, %v848_v0  ;;  %287 = vperm.xlu1 %815, %v42_v49  }
  0x31   :  { %282 = vperm.xlu0 %814, %v41_v50   ;;  %746 = vmatpush3.msra.mxu0 %v429_v55 }
  0x32   :  { %747 = vmatprep.subr.mxu0 %v848_v0  ;;  %782 = vmatprep.subr.mxu1 %v848_v0 }
  0x33   :  { %748 = vmatpush3.msra.mxu0 %v428_v57  ;;  %783 = vmatpush3.msra.mxu1 %v412_v58 }
  0x34   :  { %749 = vmatprep.subr.mxu0 %v848_v0  ;;  %784 = vmatprep.subr.mxu1 %v848_v0 }
  0x35   :  { %750 = vmatpush3.msra.mxu0 %v427_v59  ;;  %785 = vmatpush3.msra.mxu1 %v411_v60 }
  0x36   :  { %751 = vmatprep.subr.mxu0 %v848_v0  ;;  %786 = vmatprep.subr.mxu1 %v848_v0 }
  0x37   :  { %752 = vmatpush3.msra.mxu0 %v426_v61 }
  0x38   :  { %753 = vmatprep.subr.mxu0 %v848_v0 }
  0x9f   :  { %v263_v62 = vpop.permute.xlu1 %262 }
  0xa0   :  { %v253_v63 = vpop.permute.xlu0 %252 }
  0xa3   :  { %v268_v1 = vpop.permute.xlu1 %267 }
  0xa4   :  { %v258_v2 = vpop.permute.xlu0 %257 }
  0xa7   :  { %v278_v5 = vpop.permute.xlu1 %277 }
  0xa8   :  { %v273_v13 = vpop.permute.xlu0 %272 }
  0xab   :  { %v288_v23 = vpop.permute.xlu1 %287 }
  0xac   :  { %v283_v28 = vpop.permute.xlu0 %282 }
  0xe2   :  { %v246_v3 = vpop.f32.mrf.mxu1 }
  0xe3   :  { %v696_v4 = vpop.f32.mrf.mxu0  ;;  %v291_v6 = vmul.f32 %v258_v2, %v246_v3  ;;  %v290_v7 = vmul.f32 %v253_v63, %v246_v3  ;;  %v293_v12 = vmul.f32 %v268_v1, %v246_v3  ;;  %v292_v18 = vmul.f32 %v263_v62, %v246_v3 }
  0xe4   :  { %v740_v8 = vpop.f32.mrf.mxu1  ;;  %v295_v22 = vmul.f32 %v278_v5, %v246_v3  ;;  %v294_v27 = vmul.f32 %v273_v13, %v246_v3  ;;  %v297_v30 = vmul.f32 %v288_v23, %v246_v3  ;;  %v296_v38 = vmul.f32 %v283_v28, %v246_v3  ;;  %v586_v3 = vld [vmem:[%s1236_s5] ss:$0 sm:$0xff]  ;;  %v423_v23 = vld [vmem:[%s1235_s6 + $0xb8] sm:$0xff]  ;;  %v421_v28 = vld [vmem:[%s1235_s6 + $0xa8] sm:$0xff] }
  0xe5   :  { %v125_v9 = vpop.f32.mrf.mxu0  ;;  %v299_v10 = vadd.f32 %v696_v4, %v291_v6 }
  0xe6   :  { %v298_v11 = vadd.f32 %v290_v7, %v125_v9 }
  0xe7   :  { %v699_v14 = vpop.f32.mrf.mxu0  ;;  %v579_v15 = vmul.f32 -1.442695, %v299_v10 }
  0xe8   :  { %v578_v16 = vmul.f32 -1.442695, %v298_v11  ;;  %v301_v17 = vadd.f32 %v699_v14, %v293_v12 }
  0xe9   :  { %v135_v19 = vpop.f32.mrf.mxu0  ;;  %816 = vpow2.f32 %v579_v15 }
  0xea   :  { %v581_v20 = vmul.f32 -1.442695, %v301_v17  ;;  %v300_v21 = vadd.f32 %v292_v18, %v135_v19  ;;  %818 = vpow2.f32 %v578_v16  ;;  %v425_v16 = vld [vmem:[%s1235_s6 + $0xc8] sm:$0xff]  ;;  %v410_v17 = vld [vmem:[%s1235_s6 + $0x50] sm:$0xff] }
  0xeb   :  { %v702_v24 = vpop.f32.mrf.mxu0  ;;  %754 = vmatpush3.msra.mxu0 %v425_v16  ;;  %787 = vmatpush3.msra.mxu1 %v410_v17 }
  0xec   :  { %v580_v25 = vmul.f32 -1.442695, %v300_v21  ;;  %v303_v26 = vadd.f32 %v702_v24, %v295_v22  ;;  %820 = vpow2.f32 %v581_v20  ;;  %755 = vmatprep.subr.mxu0 %v848_v0  ;;  %788 = vmatprep.subr.mxu1 %v848_v0  ;;  %v424_v20 = vld [vmem:[%s1235_s6 + $0xc0] sm:$0xff]  ;;  %v409_v21 = vld [vmem:[%s1235_s6 + $0x48] sm:$0xff] }
  0xed   :  { %v145_v29 = vpop.f32.mrf.mxu0  ;;  %756 = vmatpush3.msra.mxu0 %v424_v20  ;;  %789 = vmatpush3.msra.mxu1 %v409_v21  ;;  %v408_v24 = vld [vmem:[%s1235_s6 + $0x40] sm:$0xff] }
  0xee   :  { %822 = vpow2.f32 %v580_v25  ;;  %v583_v31 = vmul.f32 -1.442695, %v303_v26  ;;  %v302_v32 = vadd.f32 %v294_v27, %v145_v29  ;;  %757 = vmatprep.subr.mxu0 %v848_v0  ;;  %790 = vmatprep.subr.mxu1 %v848_v0  ;;  %v422_v26 = vld [vmem:[%s1235_s6 + $0xb0] sm:$0xff]  ;;  %v407_v27 = vld [vmem:[%s1235_s6 + $0x38] sm:$0xff] }
  0xef   :  { %v705_v37 = vpop.f32.mrf.mxu0  ;;  %758 = vmatpush3.msra.mxu0 %v423_v23  ;;  %791 = vmatpush3.msra.mxu1 %v408_v24  ;;  %v406_v29 = vld [vmem:[%s1235_s6 + $0x30] sm:$0xff] }
  0xf0   :  { %v582_v40 = vmul.f32 -1.442695, %v302_v32  ;;  %v305_v42 = vadd.f32 %v705_v37, %v297_v30  ;;  %824 = vpow2.f32 %v583_v31  ;;  %759 = vmatprep.subr.mxu0 %v848_v0  ;;  %792 = vmatprep.subr.mxu1 %v848_v0  ;;  %v420_v30 = vld [vmem:[%s1235_s6 + $0xa0] sm:$0xff]  ;;  %v405_v31 = vld [vmem:[%s1235_s6 + $0x28] sm:$0xff]  ;;  %v419_v32 = vld [vmem:[%s1235_s6 + $0x98] sm:$0xff] }
  0xf1   :  { %v155_v43 = vpop.f32.mrf.mxu0  ;;  %760 = vmatpush3.msra.mxu0 %v422_v26  ;;  %793 = vmatpush3.msra.mxu1 %v407_v27  ;;  %v404_v37 = vld [vmem:[%s1235_s6 + $0x20] sm:$0xff] }
  0xf2   :  { %826 = vpow2.f32 %v582_v40  ;;  %v585_v46 = vmul.f32 -1.442695, %v305_v42  ;;  %v304_v47 = vadd.f32 %v296_v38, %v155_v43  ;;  %761 = vmatprep.subr.mxu0 %v848_v0  ;;  %794 = vmatprep.subr.mxu1 %v848_v0  ;;  %v418_v38 = vld [vmem:[%s1235_s6 + $0x90] sm:$0xff]  ;;  %v403_v40 = vld [vmem:[%s1235_s6 + $0x18] sm:$0xff]  ;;  %v417_v42 = vld [vmem:[%s1235_s6 + $0x88] sm:$0xff] }
  0xf3   :  { %762 = vmatpush3.msra.mxu0 %v421_v28  ;;  %795 = vmatpush3.msra.mxu1 %v406_v29  ;;  %v402_v43 = vld [vmem:[%s1235_s6 + $0x10] sm:$0xff] }
  0xf4   :  { %v584_v49 = vmul.f32 -1.442695, %v304_v47  ;;  %828 = vpow2.f32 %v585_v46  ;;  %763 = vmatprep.subr.mxu0 %v848_v0  ;;  %796 = vmatprep.subr.mxu1 %v848_v0  ;;  %v416_v46 = vld [vmem:[%s1235_s6 + $0x80] sm:$0xff]  ;;  %v401_v47 = vld [vmem:[%s1235_s6 + $0x8] sm:$0xff] }
  0xf5   :  { %764 = vmatpush3.msra.mxu0 %v420_v30  ;;  %797 = vmatpush3.msra.mxu1 %v405_v31 }
  0xf6   :  { %830 = vpow2.f32 %v584_v49  ;;  %v817_v50 = vpop.eup %816  ;;  %765 = vmatprep.subr.mxu0 %v848_v0  ;;  %798 = vmatprep.subr.mxu1 %v848_v0  ;;  %v400_v49 = vld [vmem:[%s1235_s6] sm:$0xff] }
  0xf7   :  { %v819_v51 = vpop.eup %818  ;;  %v331_v52 = vadd.f32 1.0, %v817_v50  ;;  %766 = vmatpush3.msra.mxu0 %v419_v32  ;;  %799 = vmatpush3.msra.mxu1 %v404_v37 }
  0xf8   :  { %v330_v53 = vadd.f32 1.0, %v819_v51  ;;  %767 = vmatprep.subr.mxu0 %v848_v0  ;;  %800 = vmatprep.subr.mxu1 %v848_v0 }
  0xf9   :  { %v821_v54 = vpop.eup %820  ;;  %832 = vrcp.f32 %v331_v52  ;;  %768 = vmatpush3.msra.mxu0 %v418_v38  ;;  %801 = vmatpush3.msra.mxu1 %v403_v40 }
  0xfa   :  { %834 = vrcp.f32 %v330_v53  ;;  %v333_v57 = vadd.f32 1.0, %v821_v54  ;;  %769 = vmatprep.subr.mxu0 %v848_v0  ;;  %802 = vmatprep.subr.mxu1 %v848_v0 }
  0xfb   :  { %v823_v55 = vpop.eup %822  ;;  %770 = vmatpush3.msra.mxu0 %v417_v42  ;;  %803 = vmatpush3.msra.mxu1 %v402_v43 }
  0xfc   :  { %v332_v56 = vadd.f32 1.0, %v823_v55  ;;  %771 = vmatprep.subr.mxu0 %v848_v0  ;;  %804 = vmatprep.subr.mxu1 %v848_v0 }
  0xfd   :  { %v825_v58 = vpop.eup %824  ;;  %772 = vmatpush3.msra.mxu0 %v416_v46  ;;  %805 = vmatpush3.msra.mxu1 %v401_v47 }
  0xfe   :  { %836 = vrcp.f32 %v332_v56  ;;  %v335_v61 = vadd.f32 1.0, %v825_v58  ;;  %774 = vmatmul.mubr.f32.vlgmr.msra.gmra.mxu0 %v1013_v34  ;;  %806 = vmatprep.subr.mxu1 %v848_v0 }
  0xff   :  { %v827_v59 = vpop.eup %826  ;;  %838 = vrcp.f32 %v333_v57  ;;  %807 = vmatpush3.msra.mxu1 %v400_v49 }
 0x100   :  { %v334_v60 = vadd.f32 1.0, %v827_v59 }
 0x101   :  { %v829_v62 = vpop.eup %828 }
 0x102   :  { %840 = vrcp.f32 %v334_v60  ;;  %v337_v2 = vadd.f32 1.0, %v829_v62 }
 0x103   :  { %v831_v63 = vpop.eup %830  ;;  %842 = vrcp.f32 %v335_v61 }
 0x104   :  { %v336_v1 = vadd.f32 1.0, %v831_v63 }
 0x106   :  { %844 = vrcp.f32 %v336_v1  ;;  %v833_v4 = vpop.eup %832 }
 0x107   :  { %v835_v5 = vpop.eup %834  ;;  %v362_v6 = vmul.f32 %v833_v4, %v586_v3  ;;  %846 = vrcp.f32 %v337_v2 }
 0x108   :  { %v361_v7 = vmul.f32 %v835_v5, %v586_v3 }
 0x109   :  { %371 = vadd.xlane.f32.xlu1 %v362_v6 }
 0x10a   :  { %369 = vadd.xlane.f32.xlu0 %v361_v7 }
 0x10b   :  { %v837_v8 = vpop.eup %836 }
 0x10c   :  { %v363_v9 = vmul.f32 %v837_v8, %v586_v3  ;;  %v839_v10 = vpop.eup %838 }
 0x10d   :  { %v364_v13 = vmul.f32 %v839_v10, %v586_v3 }
 0x10e   :  { %373 = vadd.xlane.f32.xlu0 %v363_v9 }
 0x10f   :  { %v841_v11 = vpop.eup %840 }
 0x110   :  { %v365_v12 = vmul.f32 %v841_v11, %v586_v3  ;;  %v843_v14 = vpop.eup %842 }
 0x111   :  { %v366_v19 = vmul.f32 %v843_v14, %v586_v3 }
 0x112   :  { %377 = vadd.xlane.f32.xlu1 %v365_v12  ;;  %375 = vadd.xlane.f32.xlu0 %v364_v13 }
 0x113   :  { %v845_v15 = vpop.eup %844 }
 0x114   :  { %v367_v18 = vmul.f32 %v845_v15, %v586_v3  ;;  %v847_v22 = vpop.eup %846 }
 0x115   :  { %v368_v25 = vmul.f32 %v847_v22, %v586_v3 }
 0x116   :  { %381 = vadd.xlane.f32.xlu1 %v367_v18  ;;  %379 = vadd.xlane.f32.xlu0 %v366_v19 }
 0x11a   :  { %383 = vadd.xlane.f32.xlu0 %v368_v25 }
 0x192   :  { %v372_v50 = vpop.xlane.xlu1 %371 }
 0x193   :  { %v370_v51 = vpop.xlane.xlu0 %369  ;;  %v386_v52 = vmul.f32 %v372_v50, %v1018_v35 }
 0x194   :  { %v385_v53 = vmul.f32 %v370_v51, %v1007_v33 }
 0x196   :  { %v393_v56 = vadd.f32 %v386_v52, %v385_v53 }
 0x197   :  { %v374_v54 = vpop.xlane.xlu0 %373 }
 0x198   :  { %v387_v55 = vmul.f32 %v374_v54, %v1023_v36 }
 0x19a   :  { %v394_v59 = vadd.f32 %v393_v56, %v387_v55 }
 0x19b   :  { %v378_v57 = vpop.xlane.xlu1 %377  ;;  %v376_v58 = vpop.xlane.xlu0 %375 }
 0x19c   :  { %v388_v60 = vmul.f32 %v376_v58, %v1038_v39  ;;  %v389_v34 = vmul.f32 %v378_v57, %v1043_v41 }
 0x19e   :  { %v395_v61 = vadd.f32 %v394_v59, %v388_v60 }
 0x19f   :  { %v380_v0 = vpop.xlane.xlu0 %379  ;;  %v382_v62 = vpop.xlane.xlu1 %381 }
 0x1a0   :  { %v396_v63 = vadd.f32 %v395_v61, %v389_v34  ;;  %v390_v1 = vmul.f32 %v380_v0, %v1058_v44  ;;  %v391_v33 = vmul.f32 %v382_v62, %v1065_v45 }
 0x1a2   :  { %v397_v35 = vadd.f32 %v396_v63, %v390_v1 }
 0x1a3   :  { %v384_v2 = vpop.xlane.xlu0 %383 }
 0x1a4   :  { %v398_v3 = vadd.f32 %v397_v35, %v391_v33  ;;  %v392_v36 = vmul.f32 %v384_v2, %v1078_v48 }
 0x1a6   :  { %v399_v4 = vadd.f32 %v398_v3, %v392_v36 }
 0x1a8   :  { %809 = vmatmul.mubr.f32.vlgmr.msra.gmra.mxu1 %v399_v4 }
 0x1be   :  { %v498_v5 = vpop.f32.mrf.mxu0 }
 0x1c0   :  { %v775_v6 = vpop.f32.mrf.mxu0 }
 0x268   :  { %v568_v39 = vpop.f32.mrf.mxu1 }
 0x269   :  { %v569_v7 = vadd.f32 %v568_v39, %v498_v5 }
 0x26a   :  { %v810_v8 = vpop.f32.mrf.mxu1 }
 0x26b   :  { %v572_v41 = vpack.c.bf16 %v569_v7, %v569_v7 }
 0x26d   :  { %573 = vst [vmem:[%s1237_s7] sm:$0xf] %v572_v41 }

// kernel: rec_model_forward.3
= control target key start
LH: loop header
LB: loop body
LE: loop exit
PB: predicated region body
PF: predicated region fallthrough
CT: control target
= control target key end

     0   :  { %v389_v0 = vmov 0.0   ;;  %s423_s18 = smov 0   ;;  %s620_s0 = inlined_call_operand.vmem [shape: f32[8,8,384], index: 0, kind: input, shape index: {}]   ;;  %s621_s1 = inlined_call_operand.vmem [shape: f32[8,8,1], index: 1, kind: input, shape index: {}]   ;;  %s622_s2 = inlined_call_operand.vmem [shape: f32[128,384], index: 2, kind: input, shape index: {}]   ;;  %s623_s3 = inlined_call_operand.vmem [shape: f32[1,384], index: 3, kind: input, shape index: {}]   ;;  %s624_s4 = inlined_call_operand.vmem [shape: f32[8,8,128], index: 4, kind: output, shape index: {0}]   ;;  %s625_s5 = inlined_call_operand.vmem [shape: f32[8,128], index: 5, kind: output, shape index: {1}]  }
   0x1   :  { %19 = vst [vmem:[#allocation2] sm:$0xff] %v389_v0 }
   0x2 LB: > { %v82_v1 = vld [vmem:[%s622_s2 + $0x170] sm:$0xff]  ;;  %v81_v2 = vld [vmem:[%s622_s2 + $0x168] sm:$0xff]  ;;  %v79_v3 = vld [vmem:[%s622_s2 + $0x158] sm:$0xff]  ;;  %v390_v5 = vmov 0.0   ;;  %vm391_vm0 = vmmov 0   ;;  %v392_v9 = vmov 0   ;;  %v86_v54 = vlaneseq  ;;  %s387_s18 = sphi %s423_s18, %s25_s18  }
   0x3   : > { %101 = vmatprep.subr.mxu0 %v82_v1  ;;  %v78_v4 = vld [vmem:[%s622_s2 + $0x150] sm:$0xff]  ;;  %165 = vmatprep.mubr.f32.mxu0 %v390_v5  ;;  %v76_v6 = vld [vmem:[%s622_s2 + $0x140] sm:$0xff]  ;;  %v75_v7 = vld [vmem:[%s622_s2 + $0x138] sm:$0xff]  ;;  %s302_s21 = sshll.u32 %s387_s18, 3  ;;  %s305_s24 = smul.u32 24, %s387_s18 }
   0x4   : > { %102 = vmatpush1.msra.mxu0 %v81_v2  ;;  %323 = vmatprep.subr.mxu1 %v390_v5  ;;  %v73_v8 = vld [vmem:[%s622_s2 + $0x128] sm:$0xff]  ;;  %v72_v10 = vld [vmem:[%s622_s2 + $0x120] sm:$0xff]  ;;  %v70_v11 = vld [vmem:[%s622_s2 + $0x110] sm:$0xff]  ;;  %s34_s7 = scalar_lea.vmem %s621_s1, %s302_s21  ;;  %v87_v55 = vshrl.u32 %v86_v54, 7  ;;  %s25_s18 = sadd.s32 1, %s387_s18  }
   0x5   : > { %103 = vmatprep.subr.mxu0 %v79_v3  ;;  %355 = vmatprep.mubr.msk.f32.mxu1 %vm391_vm0, %v390_v5  ;;  %v69_v12 = vld [vmem:[%s622_s2 + $0x108] sm:$0xff]  ;;  %v67_v13 = vld [vmem:[%s622_s2 + $0xf8] sm:$0xff]  ;;  %v66_v14 = vld [vmem:[%s622_s2 + $0xf0] sm:$0xff]  ;;  %s29_s29 = scalar_lea.vmem %s620_s0, %s305_s24  ;;  %p22_p0 = scmp.ge.s32.totalorder %s25_s18, 8  }
   0x6   : > { %104 = vmatpush1.msra.mxu0 %v78_v4  ;;  %370 = vset.pattern.permute.xlu0 %v392_v9  ;;  %v64_v15 = vld [vmem:[%s622_s2 + $0xe0] sm:$0xff]  ;;  %v63_v16 = vld [vmem:[%s622_s2 + $0xd8] sm:$0xff]  ;;  %v61_v19 = vld [vmem:[%s622_s2 + $0xc8] sm:$0xff]  ;;  %v88_v56 = vsub.s32 0, %v87_v55  ;;  %v92_v59 = vsub.s32 1, %v87_v55 }
   0x7   : > { %105 = vmatprep.subr.mxu0 %v76_v6  ;;  %v83_v17 = vld [vmem:[%s622_s2 + $0x178] sm:$0xff]  ;;  %v80_v18 = vld [vmem:[%s622_s2 + $0x160] sm:$0xff]  ;;  %v77_v21 = vld [vmem:[%s622_s2 + $0x148] sm:$0xff] }
   0x8   : > { %106 = vmatpush1.msra.mxu0 %v75_v7  ;;  %324 = vmatpush3.msra.mxu1 %v83_v17  ;;  %v60_v20 = vld [vmem:[%s622_s2 + $0xc0] sm:$0xff]  ;;  %v58_v22 = vld [vmem:[%s622_s2 + $0xb0] sm:$0xff]  ;;  %v57_v23 = vld [vmem:[%s622_s2 + $0xa8] sm:$0xff] }
   0x9   : > { %107 = vmatprep.subr.mxu0 %v73_v8  ;;  %325 = vmatprep.subr.mxu1 %v390_v5  ;;  %v74_v24 = vld [vmem:[%s622_s2 + $0x130] sm:$0xff]  ;;  %v55_v25 = vld [vmem:[%s622_s2 + $0x98] sm:$0xff]  ;;  %v52_v28 = vld [vmem:[%s622_s2 + $0x80] sm:$0xff] }
   0xa   : > { %108 = vmatpush1.msra.mxu0 %v72_v10  ;;  %326 = vmatpush3.msra.mxu1 %v80_v18  ;;  %v54_v26 = vld [vmem:[%s622_s2 + $0x90] sm:$0xff]  ;;  %v71_v27 = vld [vmem:[%s622_s2 + $0x118] sm:$0xff]  ;;  %v68_v30 = vld [vmem:[%s622_s2 + $0x100] sm:$0xff] }
   0xb   : > { %109 = vmatprep.subr.mxu0 %v70_v11  ;;  %327 = vmatprep.subr.mxu1 %v390_v5  ;;  %v51_v29 = vld [vmem:[%s622_s2 + $0x78] sm:$0xff]  ;;  %v49_v31 = vld [vmem:[%s622_s2 + $0x68] sm:$0xff]  ;;  %v48_v32 = vld [vmem:[%s622_s2 + $0x60] sm:$0xff]  ;;  %v96_v11 = vsub.s32 2, %v87_v55 }
   0xc   : > { %110 = vmatpush1.msra.mxu0 %v69_v12  ;;  %328 = vmatpush3.msra.mxu1 %v77_v21  ;;  %v65_v33 = vld [vmem:[%s622_s2 + $0xe8] sm:$0xff]  ;;  %v46_v34 = vld [vmem:[%s622_s2 + $0x50] sm:$0xff]  ;;  %v43_v37 = vld [vmem:[%s622_s2 + $0x38] sm:$0xff] }
   0xd   : > { %111 = vmatprep.subr.mxu0 %v67_v13  ;;  %329 = vmatprep.subr.mxu1 %v390_v5  ;;  %v45_v35 = vld [vmem:[%s622_s2 + $0x48] sm:$0xff]  ;;  %v62_v36 = vld [vmem:[%s622_s2 + $0xd0] sm:$0xff]  ;;  %v59_v39 = vld [vmem:[%s622_s2 + $0xb8] sm:$0xff] }
   0xe   : > { %112 = vmatpush1.msra.mxu0 %v66_v14  ;;  %330 = vmatpush3.msra.mxu1 %v74_v24  ;;  %v42_v38 = vld [vmem:[%s622_s2 + $0x30] sm:$0xff]  ;;  %v40_v40 = vld [vmem:[%s622_s2 + $0x20] sm:$0xff]  ;;  %v39_v41 = vld [vmem:[%s622_s2 + $0x18] sm:$0xff] }
   0xf   : > { %113 = vmatprep.subr.mxu0 %v64_v15  ;;  %331 = vmatprep.subr.mxu1 %v390_v5  ;;  %v56_v42 = vld [vmem:[%s622_s2 + $0xa0] sm:$0xff]  ;;  %v37_v43 = vld [vmem:[%s622_s2 + $0x8] sm:$0xff]  ;;  %v50_v47 = vld [vmem:[%s622_s2 + $0x70] sm:$0xff] }
  0x10   : > { %114 = vmatpush1.msra.mxu0 %v63_v16  ;;  %332 = vmatpush3.msra.mxu1 %v71_v27  ;;  %v36_v44 = vld [vmem:[%s622_s2] sm:$0xff]  ;;  %v53_v45 = vld [vmem:[%s622_s2 + $0x88] sm:$0xff]  ;;  %v47_v49 = vld [vmem:[%s622_s2 + $0x58] sm:$0xff] }
  0x11   : > { %115 = vmatprep.subr.mxu0 %v61_v19  ;;  %333 = vmatprep.subr.mxu1 %v390_v5  ;;  %v575_v46 = vld [vmem:[#allocation2] sm:$0xff]  ;;  %v41_v52 = vld [vmem:[%s622_s2 + $0x28] sm:$0xff]  ;;  %v38_v53 = vld [vmem:[%s622_s2 + $0x10] sm:$0xff] }
  0x12   : > { %116 = vmatpush1.msra.mxu0 %v60_v20  ;;  %334 = vmatpush3.msra.mxu1 %v68_v30  ;;  %v35_v48 = vld [vmem:[%s34_s7] sm:$0xff]  ;;  %v31_v4 = vld [vmem:[%s29_s29 + $0x8] sm:$0xff]  ;;  %v32_v17 = vld [vmem:[%s29_s29 + $0x10] sm:$0xff]  ;;  %s269_s7 = scalar_lea.vmem %s624_s4, %s302_s21 }
  0x13   : > { %117 = vmatprep.subr.mxu0 %v58_v22  ;;  %335 = vmatprep.subr.mxu1 %v390_v5  ;;  %v271_v50 = vsub.f32 1.0, %v35_v48  ;;  %v44_v51 = vld [vmem:[%s622_s2 + $0x40] sm:$0xff] }
  0x14   : > { %118 = vmatpush1.msra.mxu0 %v57_v23  ;;  %336 = vmatpush3.msra.mxu1 %v65_v33  ;;  %v84_v57 = vld [vmem:[%s623_s3] sm:$0x7] }
  0x15   : > { %119 = vmatprep.subr.mxu0 %v55_v25  ;;  %337 = vmatprep.subr.mxu1 %v390_v5  ;;  %v89_v58 = vrot.slane %v84_v57, %v88_v56  ;;  %v30_v60 = vld [vmem:[%s29_s29] sm:$0xff]  ;;  %v93_v63 = vrot.slane %v84_v57, %v92_v59  ;;  %v97_v12 = vrot.slane %v84_v57, %v96_v11 }
  0x16   : > { %120 = vmatpush1.msra.mxu0 %v54_v26  ;;  %338 = vmatpush3.msra.mxu1 %v62_v36 }
  0x17   : > { %121 = vmatprep.subr.mxu0 %v52_v28  ;;  %339 = vmatprep.subr.mxu1 %v390_v5 }
  0x18   : > { %122 = vmatpush1.msra.mxu0 %v51_v29  ;;  %340 = vmatpush3.msra.mxu1 %v59_v39 }
  0x19   : > { %123 = vmatprep.subr.mxu0 %v49_v31  ;;  %341 = vmatprep.subr.mxu1 %v390_v5 }
  0x1a   : > { %124 = vmatpush1.msra.mxu0 %v48_v32  ;;  %342 = vmatpush3.msra.mxu1 %v56_v42 }
  0x1b   : > { %125 = vmatprep.subr.mxu0 %v46_v34  ;;  %343 = vmatprep.subr.mxu1 %v390_v5 }
  0x1c   : > { %126 = vmatpush1.msra.mxu0 %v45_v35  ;;  %344 = vmatpush3.msra.mxu1 %v53_v45 }
  0x1d   : > { %127 = vmatprep.subr.mxu0 %v43_v37  ;;  %345 = vmatprep.subr.mxu1 %v390_v5 }
  0x1e   : > { %128 = vmatpush1.msra.mxu0 %v42_v38  ;;  %346 = vmatpush3.msra.mxu1 %v50_v47 }
  0x1f   : > { %129 = vmatprep.subr.mxu0 %v40_v40  ;;  %265 = vperm.xlu0 %370, %v35_v48  }
  0x20   : > { %130 = vmatpush1.msra.mxu0 %v39_v41  ;;  %347 = vmatprep.subr.mxu1 %v390_v5 }
  0x21   : > { %131 = vmatprep.subr.mxu0 %v37_v43  ;;  %348 = vmatpush3.msra.mxu1 %v47_v49 }
  0x22   : > { %132 = vmatpush1.msra.mxu0 %v36_v44  ;;  %349 = vmatprep.subr.mxu1 %v390_v5 }
  0x23   : > { %166 = vmatmul.mubr.f32.vlgmr.msra.gmra.mxu0 %v575_v46  ;;  %350 = vmatpush3.msra.mxu1 %v44_v51 }
  0x24   : > { %274 = vperm.xlu0 %370, %v271_v50   ;;  %351 = vmatprep.subr.mxu1 %v390_v5 }
  0x25   : > { %352 = vmatpush3.msra.mxu1 %v41_v52 }
  0x26   : > { %353 = vmatprep.subr.mxu1 %v390_v5 }
  0x27   : > { %354 = vmatpush3.msra.mxu1 %v38_v53 }
  0x28   : > { %356 = vmatmul.mubr.f32.vlgmr.msra.gmra.mxu1 %v575_v46 }
  0x9a   : > { %v266_v21 = vpop.permute.xlu0 %265 }
  0x9f   : > { %v275_v26 = vpop.permute.xlu0 %274 }
  0xa0   : > { %v277_v29 = vmul.f32 %v275_v26, %v575_v46 }
  0xe3   : > { %v167_v61 = vpop.f32.mrf.mxu0 }
  0xe4   : > { %v168_v62 = vadd.f32 %v167_v61, %v89_v58 }
  0xe5   : > { %v169_v0 = vpop.f32.mrf.mxu0 }
  0xe6   : > { %v242_v1 = vadd.f32 %v168_v62, %v30_v60  ;;  %v170_v3 = vadd.f32 %v169_v0, %v93_v63 }
  0xe8   : > { %v303_v2 = vmul.f32 -1.442695, %v242_v1  ;;  %v249_v5 = vadd.f32 %v170_v3, %v31_v4  ;;  %v238_v6 = vpop.f32.mrf.mxu1 }
  0xe9   : > { %v239_v15 = vadd.f32 %v238_v6, %v97_v12 }
  0xea   : > { %371 = vpow2.f32 %v303_v2  ;;  %v357_v7 = vpop.f32.mrf.mxu1  ;;  %v304_v8 = vmul.f32 -1.442695, %v249_v5 }
  0xec   : > { %373 = vpow2.f32 %v304_v8 }
  0xf7   : > { %v372_v9 = vpop.eup %371 }
  0xf8   : > { %v246_v10 = vadd.f32 1.0, %v372_v9 }
  0xf9   : > { %v374_v13 = vpop.eup %373 }
  0xfa   : > { %375 = vrcp.f32 %v246_v10  ;;  %v253_v14 = vadd.f32 1.0, %v374_v13 }
  0xfc   : > { %377 = vrcp.f32 %v253_v14 }
 0x107   : > { %v376_v16 = vpop.eup %375 }
 0x108   : > { %v256_v18 = vmul.f32 %v376_v16, %v239_v15 }
 0x109   : > { %v378_v20 = vpop.eup %377 }
 0x10a   : > { %v257_v19 = vadd.f32 %v256_v18, %v32_v17  ;;  %v259_v22 = vsub.f32 1.0, %v378_v20  ;;  %v261_v25 = vmul.f32 %v378_v20, %v575_v46 }
 0x10c   : > { %379 = vtanh.f32 %v257_v19 }
 0x119   : > { %v380_v23 = vpop.eup %379 }
 0x11a   : > { %v260_v24 = vmul.f32 %v380_v23, %v259_v22 }
 0x11c   : > { %v262_v27 = vadd.f32 %v261_v25, %v260_v24 }
 0x11e   : > { %v268_v28 = vmul.f32 %v266_v21, %v262_v27  ;;  %24 = sbr.rel (!%p22_p0) target bundleno = 2 (0x2), region = 54 }
 0x120   : > { %270 = vst [vmem:[%s269_s7] sm:$0xff] %v268_v28  ;;  %v278_v30 = vadd.f32 %v277_v29, %v268_v28 }
 0x122   : > { %279 = vst [vmem:[#allocation2] sm:$0xff] %v278_v30 }
 0x129   :  { %v280_v31 = vld [vmem:[#allocation2] sm:$0xff] }
 0x12a   :  { %281 = vst [vmem:[%s625_s5] sm:$0xff] %v280_v31 }

// kernel: rec_model_forward.5
= control target key start
LH: loop header
LB: loop body
LE: loop exit
PB: predicated region body
PF: predicated region fallthrough
CT: control target
= control target key end

     0   :  { %s394_s9 = smov 0   ;;  %s419_s0 = inlined_call_operand.vmem [shape: bf16[8,128], index: 0, kind: input, shape index: {}]   ;;  %s420_s1 = inlined_call_operand.vmem [shape: bf16[384,128], index: 1, kind: input, shape index: {}]   ;;  %s421_s2 = inlined_call_operand.vmem [shape: f32[8,384], index: 2, kind: output, shape index: {}]  }
   0x1 LB: > { %s400_s10 = sadd.s32 4294967295, %s375_s9   ;;  %p308_p0 = scmp.ge.s32.totalorder %s375_s9, 1  ;;  %s375_s9 = sphi %s394_s9, %s12_s9  }
   0x2   : > { %p113_p1 = scmp.lt.s32.totalorder %s375_s9, 4 }
   0x4   : > { %p114_p2 = pnand %p308_p0, %p113_p1 }
   0x5   : > { %s309_s11 = sshll.u32 (!%p114_p2), %s400_s10, 4  ;;  %p140_p4 = scmp.lt.s32.totalorder (!%p114_p2), %s400_s10, 2 }
   0x6   : > { %117 = sbr.rel (%p114_p2) target bundleno = 277 (0x115), region = 28  ;;  %p135_p3 = scmp.lt.s32.totalorder (!%p114_p2), %s309_s11, 47 }
   0xb   : > { %v377_v0 = vmov 0.0   ;;  %vm378_vm0 = vmmov 0   ;;  %s423_s11 = smov (!%p135_p3, %s309_s11), 47  ;;  %v145_v9 = vld [vmem:[%s419_s0] sm:$0xf]  ;;  %s425_s10 = smov (!%p140_p4, %s400_s10), 2 }
   0xc   : > { %331 = vmatprep.subr.bf16.mxu0 %v377_v0  ;;  %347 = vmatprep.mubr.msk.bf16.mxu0 %vm378_vm0, %v377_v0  ;;  %s310_s12 = sshll.u32 %s423_s11, 2  ;;  %s311_s18 = sshll.u32 %s425_s10, 3 }
   0xd   : > { %s138_s15 = scalar_lea.vmem %s420_s1, %s310_s12  ;;  %s143_s21 = scalar_lea.vmem %s421_s2, %s311_s18 }
   0xe   : > { %v361_v1 = vld [vmem:[%s138_s15 + $0x38] sm:$0xff]   ;;  %v362_v2 = vld [vmem:[%s138_s15 + $0x30] sm:$0xff]   ;;  %v363_v3 = vld [vmem:[%s138_s15 + $0x28] sm:$0xff]  }
   0xf   : > { %332 = vmatpush3.bf16.xpose.msra.mxu0 %v361_v1  ;;  %v364_v4 = vld [vmem:[%s138_s15 + $0x20] sm:$0xff]   ;;  %v365_v5 = vld [vmem:[%s138_s15 + $0x18] sm:$0xff]   ;;  %v366_v6 = vld [vmem:[%s138_s15 + $0x10] sm:$0xff]  }
  0x10   : > { %333 = vmatprep.subr.bf16.mxu0 %v377_v0  ;;  %v367_v7 = vld [vmem:[%s138_s15 + $0x8] sm:$0xff]   ;;  %v368_v8 = vld [vmem:[%s138_s15] sm:$0xff]  }
  0x17   : > { %334 = vmatpush3.bf16.xpose.msra.mxu0 %v362_v2 }
  0x18   : > { %335 = vmatprep.subr.bf16.mxu0 %v377_v0 }
  0x1f   : > { %336 = vmatpush3.bf16.xpose.msra.mxu0 %v363_v3 }
  0x20   : > { %337 = vmatprep.subr.bf16.mxu0 %v377_v0 }
  0x27   : > { %338 = vmatpush3.bf16.xpose.msra.mxu0 %v364_v4 }
  0x28   : > { %339 = vmatprep.subr.bf16.mxu0 %v377_v0 }
  0x2f   : > { %340 = vmatpush3.bf16.xpose.msra.mxu0 %v365_v5 }
  0x30   : > { %341 = vmatprep.subr.bf16.mxu0 %v377_v0 }
  0x37   : > { %342 = vmatpush3.bf16.xpose.msra.mxu0 %v366_v6 }
  0x38   : > { %343 = vmatprep.subr.bf16.mxu0 %v377_v0 }
  0x3f   : > { %344 = vmatpush3.bf16.xpose.msra.mxu0 %v367_v7 }
  0x40   : > { %345 = vmatprep.subr.bf16.mxu0 %v377_v0 }
  0x47   : > { %346 = vmatpush3.bf16.xpose.msra.mxu0 %v368_v8 }
  0x4e   : > { %348 = vmatmul.mubr.bf16.vlgmr.msra.gmra.mxu0 %v145_v9 }
 0x10e   : > { %v244_v10 = vpop.f32.mrf.mxu0 }
 0x10f   : > { %250 = vst [vmem:[%s143_s21] sm:$0xff] %v244_v10 }
 0x110   : > { %v349_v11 = vpop.f32.mrf.mxu0 }
 0x112   : > { %v247_v12 = vpop.f32.mrf.mxu0 }
 0x114   : > { %v350_v13 = vpop.f32.mrf.mxu0 }
 0x115 PF: > { %s12_s9 = sadd.s32 1, %s375_s9  }
 0x116   : > { %p9_p5 = scmp.ge.s32.totalorder %s12_s9, 5  }
 0x118   :  { %11 = sbr.rel (!%p9_p5) target bundleno = 1 (0x1), region = 58 }

</bundles_post_ra>
